<compile_context>
chip_gen: v5e
topology: v5e:2x2
jax: 0.10.0
libtpu: 0.0.40
codegen_flags: <defaults>
</compile_context>

<pallas_src>
import functools

import jax
import jax.numpy as jnp
from jax import lax
from jax.experimental import pallas as pl
from jax.experimental.pallas import tpu as pltpu

LN_EPS = 1e-5  # PyTorch nn.LayerNorm default


def _layernorm(x, gamma, beta):
    # x: (rows, D) f32; gamma/beta: (1, D)
    mean = jnp.mean(x, axis=-1, keepdims=True)
    var = jnp.mean((x - mean) ** 2, axis=-1, keepdims=True)
    return (x - mean) * lax.rsqrt(var + LN_EPS) * gamma + beta


# ----------------------------------------------------------------------------
# Fused kernel: one grid step == one transformer layer applied to one batch tile
# ----------------------------------------------------------------------------
def transformer_layer_kernel(x_ref, g1_ref, be1_ref, wqkv_ref, wo_ref, bo_ref,
                             g2_ref, be2_ref, w1_ref, bb1_ref, w2_ref, bb2_ref,
                             o_ref, acc_ref, qkv_scr, head_scr,
                             *, batch_per_block, seq_len, heads, dim_head):
    d = pl.program_id(1)                       # depth (layer) index — last grid axis
    cdt = wqkv_ref.dtype                       # MXU operand dtype (f32 or bf16)
    inner = heads * dim_head

    # First layer for this batch tile: load activation into the resident f32 scratch.
    @pl.when(d == 0)
    def _():
        acc_ref[...] = x_ref[...].astype(jnp.float32)

    # ----------------- PreNorm + Attention + residual -----------------
    xn = _layernorm(acc_ref[...], g1_ref[...], be1_ref[...])
    # One big QKV projection for every token in the block; staged in VMEM.
    # (1/sqrt(dim_head) is pre-folded into the q-columns of W_qkv.)
    qkv_scr[...] = jnp.dot(xn.astype(cdt), wqkv_ref[...],
                           preferred_element_type=jnp.float32).astype(qkv_scr.dtype)

    def attn_batch(b, carry):
        r0 = pl.multiple_of(b * seq_len, seq_len)       # dynamic sublane offset
        for h in range(heads):                           # static lane offsets per head
            cq = h * dim_head
            ck = inner + cq
            cv = 2 * inner + cq
            q = qkv_scr[pl.ds(r0, seq_len), cq:cq + dim_head]   # (N, dh) cdt
            k = qkv_scr[pl.ds(r0, seq_len), ck:ck + dim_head]
            v = qkv_scr[pl.ds(r0, seq_len), cv:cv + dim_head]
            # q @ k^T via dot_general (contract last dims) — no materialized transpose.
            dots = lax.dot_general(q, k, (((1,), (1,)), ((), ())),
                                   preferred_element_type=jnp.float32)
            dots = dots - jnp.max(dots, axis=-1, keepdims=True)
            e = jnp.exp(dots)
            p = e * pl.reciprocal(jnp.sum(e, axis=-1, keepdims=True), approx=True)
            o_h = jnp.dot(p.astype(cdt), v, preferred_element_type=jnp.float32)
            # Stage the head output at its lane offset; projection happens once below.
            head_scr[pl.ds(r0, seq_len), cq:cq + dim_head] = o_h.astype(head_scr.dtype)
        return carry

    lax.fori_loop(0, batch_per_block, attn_batch, 0,
                  unroll=min(batch_per_block, 2))

    # Single MXU-dense output projection for the whole block: (rows, inner) @ (inner, D).
    proj = jnp.dot(head_scr[...], wo_ref[...], preferred_element_type=jnp.float32)
    acc_ref[...] = acc_ref[...] + proj + bo_ref[...]     # residual

    # ----------------- PreNorm + FeedForward + residual -----------------
    x2 = acc_ref[...]
    xn2 = _layernorm(x2, g2_ref[...], be2_ref[...])
    h1 = jnp.dot(xn2.astype(cdt), w1_ref[...],
                 preferred_element_type=jnp.float32) + bb1_ref[...]
    # exact GELU (PyTorch nn.GELU default): 0.5*x*(1+erf(x/sqrt(2)))
    h1 = 0.5 * h1 * (1.0 + lax.erf(h1 * 0.7071067811865476))
    y = jnp.dot(h1.astype(cdt), w2_ref[...],
                preferred_element_type=jnp.float32) + bb2_ref[...]
    acc_ref[...] = x2 + y

    # Last layer: write the output once for the whole batch tile.
    @pl.when(d == pl.num_programs(1) - 1)
    def _():
        o_ref[...] = acc_ref[...].astype(o_ref.dtype)


# ----------------------------------------------------------------------------
# Wrapper
# ----------------------------------------------------------------------------
def transformer_forward(x, layers, *, heads, dim_head,
                        compute_dtype=jnp.bfloat16, batch_block=None):
    """x: (B, N, D). layers: list of dicts with 'attn' and 'ff' parameter tuples."""
    B, N, D = x.shape
    depth = len(layers)
    inner = heads * dim_head
    scale = dim_head ** -0.5
    mlp_dim = layers[0]["ff"][2].shape[1]
    assert N % 8 == 0, "pad N to a multiple of 8 (and mask the softmax) for real ViT shapes"

    if batch_block is None:
        # >=2 batch tiles lets ('parallel', ...) shard tiles across v7x's 2 TensorCores.
        batch_block = B // 2 if (B >= 2 and B % 2 == 0) else B
    assert B % batch_block == 0
    num_bt = B // batch_block
    rows = batch_block * N

    def stack(group, i, cast=False):
        arr = jnp.stack([layer[group][i] for layer in layers], axis=0)  # (depth, ...)
        return arr.astype(compute_dtype) if cast else arr

    ln1_g = stack("attn", 0); ln1_b = stack("attn", 1)
    # Fold the softmax scale into the q-columns of W_qkv (free constant weight transform).
    wqkv = jnp.stack([layer["attn"][2].at[:, :inner].multiply(scale) for layer in layers],
                     axis=0).astype(compute_dtype)
    wout = stack("attn", 3, cast=True)
    bout = stack("attn", 4)
    ln2_g = stack("ff", 0); ln2_b = stack("ff", 1)
    w1 = stack("ff", 2, cast=True); b1 = stack("ff", 3)
    w2 = stack("ff", 4, cast=True); b2 = stack("ff", 5)

    xf = x.reshape(B * N, D)       # flatten tokens: bigger MXU tiles, one block per batch tile

    # Explicit VMEM budget: double-buffered per-layer weights + io blocks + scratches,
    # clamped under v7x's 64 MiB physical VMEM (v5e/v6e have 128 MiB).
    cbytes = jnp.dtype(compute_dtype).itemsize
    per_layer_w = cbytes * (D * 3 * inner + inner * D + D * mlp_dim + mlp_dim * D) \
        + 4 * (4 * D + 2 * D + mlp_dim)                      # LN params + biases (f32)
    io_bytes = 2 * 2 * rows * D * x.dtype.itemsize           # in + out, double-buffered
    scratch_bytes = rows * D * 4 + rows * (4 * inner) * cbytes
    need = 2 * per_layer_w + io_bytes + scratch_bytes + (4 << 20)
    vmem_limit = int(min(max(need, 32 << 20), 60 << 20))

    def wspec(arr):
        # Stream one layer's worth of this parameter per depth step (double-buffered).
        s = arr.shape
        return pl.BlockSpec((None,) + s[1:], lambda bt, d, s=s: (d,) + (0,) * (len(s) - 1))

    kernel = functools.partial(
        transformer_layer_kernel,
        batch_per_block=batch_block, seq_len=N, heads=heads, dim_head=dim_head)

    out = pl.pallas_call(
        kernel,
        out_shape=jax.ShapeDtypeStruct((B * N, D), x.dtype),
        grid=(num_bt, depth),      # depth (carried/sequential) axis last
        in_specs=[pl.BlockSpec((rows, D), lambda bt, d: (bt, 0))]
                 + [wspec(a) for a in (ln1_g, ln1_b, wqkv, wout, bout,
                                       ln2_g, ln2_b, w1, b1, w2, b2)],
        out_specs=pl.BlockSpec((rows, D), lambda bt, d: (bt, 0)),
        scratch_shapes=[pltpu.VMEM((rows, D), jnp.float32),          # resident activation
                        pltpu.VMEM((rows, 3 * inner), compute_dtype),  # staged QKV
                        pltpu.VMEM((rows, inner), compute_dtype)],     # staged head outputs
        input_output_aliases={0: 0},   # x only read at d==0, o only written at d==last
        compiler_params=pltpu.CompilerParams(
            dimension_semantics=("parallel", "arbitrary"),
            vmem_limit_bytes=vmem_limit),
    )(xf, ln1_g, ln1_b, wqkv, wout, bout, ln2_g, ln2_b, w1, b1, w2, b2)

    return out.reshape(B, N, D)


# ----------------------------------------------------------------------------
# Pure-JAX reference (for sanity check)
# ----------------------------------------------------------------------------
def _ref_forward(x, layers, *, heads, dim_head):
    def ln(x, g, b):
        m = jnp.mean(x, axis=-1, keepdims=True)
        v = jnp.mean((x - m) ** 2, axis=-1, keepdims=True)
        return (x - m) / jnp.sqrt(v + LN_EPS) * g + b

    for layer in layers:
        g, b, wqkv, wout, bout = layer["attn"]
        B, N, D = x.shape
        inner = heads * dim_head
        xn = ln(x, g, b)
        qkv = xn @ wqkv
        q, k, v = jnp.split(qkv, 3, axis=-1)

        def rh(t):  # b n (h d) -> b h n d
            return t.reshape(B, N, heads, dim_head).transpose(0, 2, 1, 3)

        q, k, v = rh(q), rh(k), rh(v)
        dots = jnp.einsum("bhnd,bhmd->bhnm", q, k) * (dim_head ** -0.5)
        attn = jax.nn.softmax(dots, axis=-1)
        out = jnp.einsum("bhnm,bhmd->bhnd", attn, v)
        out = out.transpose(0, 2, 1, 3).reshape(B, N, inner)
        x = out @ wout + bout + x

        g, b, w1, b1, w2, b2 = layer["ff"]
        xn = ln(x, g, b)
        h = xn @ w1 + b1
        h = 0.5 * h * (1.0 + lax.erf(h * 0.7071067811865476))
        x = h @ w2 + b2 + x
    return x


# ----------------------------------------------------------------------------
# Main
# ----------------------------------------------------------------------------
if __name__ == "__main__":
    B, N = 2, 8
    dim, depth, heads, dim_head, mlp_dim = 32, 2, 4, 8, 64
    inner = heads * dim_head

    key = jax.random.PRNGKey(0)
    key, xk = jax.random.split(key)
    x = jax.random.normal(xk, (B, N, dim), dtype=jnp.float32)

    layers = []
    for _ in range(depth):
        keys = jax.random.split(key, 9)
        key = keys[0]
        attn_params = (
            jnp.ones((1, dim), jnp.float32),                                   # LN gamma
            jnp.zeros((1, dim), jnp.float32),                                  # LN beta
            0.02 * jax.random.normal(keys[1], (dim, 3 * inner), jnp.float32),  # W_qkv (no bias)
            0.02 * jax.random.normal(keys[2], (inner, dim), jnp.float32),      # W_out
            0.02 * jax.random.normal(keys[3], (1, dim), jnp.float32),          # b_out
        )
        ff_params = (
            jnp.ones((1, dim), jnp.float32),                                   # LN gamma
            jnp.zeros((1, dim), jnp.float32),                                  # LN beta
            0.02 * jax.random.normal(keys[4], (dim, mlp_dim), jnp.float32),    # W1
            0.02 * jax.random.normal(keys[5], (1, mlp_dim), jnp.float32),      # b1
            0.02 * jax.random.normal(keys[6], (mlp_dim, dim), jnp.float32),    # W2
            0.02 * jax.random.normal(keys[7], (1, dim), jnp.float32),          # b2
        )
        layers.append({"attn": attn_params, "ff": ff_params})

    ref = _ref_forward(x, layers, heads=heads, dim_head=dim_head)

    # f32 MXU-operand path: tight check (tolerance accounts for approx-reciprocal softmax).
    out = transformer_forward(x, layers, heads=heads, dim_head=dim_head,
                              compute_dtype=jnp.float32)
    out = jax.block_until_ready(out)
    assert out.shape == (B, N, dim)
    assert jnp.allclose(out, ref, atol=2e-3, rtol=2e-3), "f32 mismatch vs reference"

    # bf16 MXU-operand production path (f32 accumulation + f32 LN/softmax stats).
    out_bf16 = transformer_forward(x, layers, heads=heads, dim_head=dim_head)
    out_bf16 = jax.block_until_ready(out_bf16)
    assert jnp.allclose(out_bf16, ref, atol=5e-2, rtol=5e-2), "bf16 mismatch vs reference"

    print("KERNEL_OK")
</pallas_src>

<mosaic_0001>
module attributes {stable_mosaic.version = 11 : i64} {
  func.func @transformer_layer_kernel(%arg0: i32, %arg1: i32, %arg2: memref<8x32xf32, #tpu.memory_space<vmem>>, %arg3: memref<1x1x32xf32, #tpu.memory_space<vmem>>, %arg4: memref<1x1x32xf32, #tpu.memory_space<vmem>>, %arg5: memref<1x32x96xf32, #tpu.memory_space<vmem>>, %arg6: memref<1x32x32xf32, #tpu.memory_space<vmem>>, %arg7: memref<1x1x32xf32, #tpu.memory_space<vmem>>, %arg8: memref<1x1x32xf32, #tpu.memory_space<vmem>>, %arg9: memref<1x1x32xf32, #tpu.memory_space<vmem>>, %arg10: memref<1x32x64xf32, #tpu.memory_space<vmem>>, %arg11: memref<1x1x64xf32, #tpu.memory_space<vmem>>, %arg12: memref<1x64x32xf32, #tpu.memory_space<vmem>>, %arg13: memref<1x1x32xf32, #tpu.memory_space<vmem>>, %arg14: memref<8x32xf32, #tpu.memory_space<vmem>>, %arg15: memref<8x32xf32, #tpu.memory_space<vmem>>, %arg16: memref<8x96xf32, #tpu.memory_space<vmem>>, %arg17: memref<8x32xf32, #tpu.memory_space<vmem>>) attributes {dimension_semantics = [#tpu.dimension_semantics<parallel>, #tpu.dimension_semantics<arbitrary>], iteration_bounds = array<i64: 2, 2>, scalar_prefetch = 0 : i64, scratch_operands = 3 : i64, tpu.core_type = #tpu.core_type<tc>, window_params = [{transform_indices = @transform_0, window_bounds = array<i64: 8, 32>}, {transform_indices = @transform_1, window_bounds = array<i64: 1, 1, 32>}, {transform_indices = @transform_2, window_bounds = array<i64: 1, 1, 32>}, {transform_indices = @transform_3, window_bounds = array<i64: 1, 32, 96>}, {transform_indices = @transform_4, window_bounds = array<i64: 1, 32, 32>}, {transform_indices = @transform_5, window_bounds = array<i64: 1, 1, 32>}, {transform_indices = @transform_6, window_bounds = array<i64: 1, 1, 32>}, {transform_indices = @transform_7, window_bounds = array<i64: 1, 1, 32>}, {transform_indices = @transform_8, window_bounds = array<i64: 1, 32, 64>}, {transform_indices = @transform_9, window_bounds = array<i64: 1, 1, 64>}, {transform_indices = @transform_10, window_bounds = array<i64: 1, 64, 32>}, {transform_indices = @transform_11, window_bounds = array<i64: 1, 1, 32>}, {transform_indices = @transform_12, window_bounds = array<i64: 8, 32>}]} {
    %c0_i32 = arith.constant 0 : i32
    %0 = arith.cmpi eq, %arg1, %c0_i32 : i32
    %1 = arith.extui %0 : i1 to i32
    %c0_i32_0 = arith.constant 0 : i32
    %2 = arith.cmpi ne, %1, %c0_i32_0 : i32
    scf.if %2 {
      %c0_87 = arith.constant 0 : index
      %c0_88 = arith.constant 0 : index
      %181 = vector.load %arg2[%c0_87, %c0_88] : memref<8x32xf32, #tpu.memory_space<vmem>>, vector<8x32xf32>
      %c0_89 = arith.constant 0 : index
      %c0_90 = arith.constant 0 : index
      %182 = vector.load %arg15[%c0_89, %c0_90] : memref<8x32xf32, #tpu.memory_space<vmem>>, vector<8x32xf32>
      tpu.vector_store %arg15[%c0_89, %c0_90], %181 {strides = array<i32>} : memref<8x32xf32, #tpu.memory_space<vmem>>, vector<8x32xf32>,
    } else {
    }
    %c0 = arith.constant 0 : index
    %c0_1 = arith.constant 0 : index
    %3 = vector.load %arg15[%c0, %c0_1] : memref<8x32xf32, #tpu.memory_space<vmem>>, vector<8x32xf32>
    %c0_2 = arith.constant 0 : index
    %c0_3 = arith.constant 0 : index
    %c0_4 = arith.constant 0 : index
    %4 = vector.load %arg3[%c0_2, %c0_3, %c0_4] : memref<1x1x32xf32, #tpu.memory_space<vmem>>, vector<1x1x32xf32>
    %5 = vector.shape_cast %4 : vector<1x1x32xf32> to vector<1x32xf32>
    %c0_5 = arith.constant 0 : index
    %c0_6 = arith.constant 0 : index
    %c0_7 = arith.constant 0 : index
    %6 = vector.load %arg4[%c0_5, %c0_6, %c0_7] : memref<1x1x32xf32, #tpu.memory_space<vmem>>, vector<1x1x32xf32>
    %7 = vector.shape_cast %6 : vector<1x1x32xf32> to vector<1x32xf32>
    %cst = arith.constant dense<0.000000e+00> : vector<8xf32>
    %8 = vector.multi_reduction <add>, %3, %cst [1] : vector<8x32xf32> to vector<8xf32>
    %9 = vector.shape_cast %8 : vector<8xf32> to vector<8x1xf32>
    %cst_8 = arith.constant 3.200000e+01 : f32
    %10 = vector.broadcast %cst_8 : f32 to vector<8x1xf32>
    %11 = arith.divf %9, %10 : vector<8x1xf32>
    %12 = vector.broadcast %11 : vector<8x1xf32> to vector<8x32xf32>
    %13 = arith.subf %3, %12 : vector<8x32xf32>
    %14 = arith.mulf %13, %13 : vector<8x32xf32>
    %cst_9 = arith.constant dense<0.000000e+00> : vector<8xf32>
    %15 = vector.multi_reduction <add>, %14, %cst_9 [1] : vector<8x32xf32> to vector<8xf32>
    %16 = vector.shape_cast %15 : vector<8xf32> to vector<8x1xf32>
    %cst_10 = arith.constant 3.200000e+01 : f32
    %17 = vector.broadcast %cst_10 : f32 to vector<8x1xf32>
    %18 = arith.divf %16, %17 : vector<8x1xf32>
    %19 = vector.broadcast %11 : vector<8x1xf32> to vector<8x32xf32>
    %20 = arith.subf %3, %19 : vector<8x32xf32>
    %cst_11 = arith.constant 9.99999974E-6 : f32
    %21 = vector.broadcast %cst_11 : f32 to vector<8x1xf32>
    %22 = arith.addf %18, %21 : vector<8x1xf32>
    %23 = math.rsqrt %22 : vector<8x1xf32>
    %24 = vector.broadcast %23 : vector<8x1xf32> to vector<8x32xf32>
    %25 = arith.mulf %20, %24 : vector<8x32xf32>
    %26 = vector.broadcast %5 : vector<1x32xf32> to vector<8x32xf32>
    %27 = arith.mulf %25, %26 : vector<8x32xf32>
    %28 = vector.broadcast %7 : vector<1x32xf32> to vector<8x32xf32>
    %29 = arith.addf %27, %28 : vector<8x32xf32>
    %c0_12 = arith.constant 0 : index
    %c0_13 = arith.constant 0 : index
    %c0_14 = arith.constant 0 : index
    %30 = vector.load %arg5[%c0_12, %c0_13, %c0_14] : memref<1x32x96xf32, #tpu.memory_space<vmem>>, vector<1x32x96xf32>
    %31 = vector.shape_cast %30 : vector<1x32x96xf32> to vector<32x96xf32>
    %cst_15 = arith.constant dense<0.000000e+00> : vector<8x96xf32>
    %32 = tpu.matmul %29, %31, %cst_15 {dimension_numbers = #tpu.dot_dimension_numbers<[1], [0], [0], [1], [0, 0, 1, 1], [], []>} : vector<8x32xf32>, vector<32x96xf32>, vector<8x96xf32> -> vector<8x96xf32>
    %c0_16 = arith.constant 0 : index
    %c0_17 = arith.constant 0 : index
    %33 = vector.load %arg16[%c0_16, %c0_17] : memref<8x96xf32, #tpu.memory_space<vmem>>, vector<8x96xf32>
    tpu.vector_store %arg16[%c0_16, %c0_17], %32 {strides = array<i32>} : memref<8x96xf32, #tpu.memory_space<vmem>>, vector<8x96xf32>,
    %c0_i32_18 = arith.constant 0 : i32
    %c8_i32 = arith.constant 8 : i32
    %34 = arith.muli %c0_i32_18, %c8_i32 : i32
    %35 = tpu.assume_multiple %34, 8 : i32
    %36 = arith.index_cast %35 : i32 to index
    %c0_19 = arith.constant 0 : index
    %37 = vector.load %arg16[%36, %c0_19] : memref<8x96xf32, #tpu.memory_space<vmem>>, vector<8x8xf32>
    %38 = arith.index_cast %35 : i32 to index
    %c32 = arith.constant 32 : index
    %39 = vector.load %arg16[%38, %c32] : memref<8x96xf32, #tpu.memory_space<vmem>>, vector<8x8xf32>
    %40 = arith.index_cast %35 : i32 to index
    %c64 = arith.constant 64 : index
    %41 = vector.load %arg16[%40, %c64] : memref<8x96xf32, #tpu.memory_space<vmem>>, vector<8x8xf32>
    %cst_20 = arith.constant dense<0.000000e+00> : vector<8x8xf32>
    %42 = tpu.matmul %37, %39, %cst_20 {dimension_numbers = #tpu.dot_dimension_numbers<[1], [1], [0], [0], [0, 0, 1, 0], [], []>} : vector<8x8xf32>, vector<8x8xf32>, vector<8x8xf32> -> vector<8x8xf32>
    %cst_21 = arith.constant dense<0xFF800000> : vector<8xf32>
    %43 = vector.multi_reduction <maximumf>, %42, %cst_21 [1] : vector<8x8xf32> to vector<8xf32>
    %44 = vector.shape_cast %43 : vector<8xf32> to vector<8x1xf32>
    %45 = vector.broadcast %44 : vector<8x1xf32> to vector<8x8xf32>
    %46 = arith.subf %42, %45 : vector<8x8xf32>
    %47 = math.exp %46 : vector<8x8xf32>
    %cst_22 = arith.constant dense<0.000000e+00> : vector<8xf32>
    %48 = vector.multi_reduction <add>, %47, %cst_22 [1] : vector<8x8xf32> to vector<8xf32>
    %49 = vector.shape_cast %48 : vector<8xf32> to vector<8x1xf32>
    %50 = tpu.reciprocal %49 {approx = true} : vector<8x1xf32> -> vector<8x1xf32>
    %51 = vector.broadcast %50 : vector<8x1xf32> to vector<8x8xf32>
    %52 = arith.mulf %47, %51 : vector<8x8xf32>
    %cst_23 = arith.constant dense<0.000000e+00> : vector<8x8xf32>
    %53 = tpu.matmul %52, %41, %cst_23 {dimension_numbers = #tpu.dot_dimension_numbers<[1], [0], [0], [1], [0, 0, 1, 1], [], []>} : vector<8x8xf32>, vector<8x8xf32>, vector<8x8xf32> -> vector<8x8xf32>
    %54 = arith.index_cast %35 : i32 to index
    %c0_24 = arith.constant 0 : index
    %55 = vector.load %arg17[%54, %c0_24] : memref<8x32xf32, #tpu.memory_space<vmem>>, vector<8x8xf32>
    tpu.vector_store %arg17[%54, %c0_24], %53 {strides = array<i32>} : memref<8x32xf32, #tpu.memory_space<vmem>>, vector<8x8xf32>,
    %56 = arith.index_cast %35 : i32 to index
    %c8 = arith.constant 8 : index
    %57 = vector.load %arg16[%56, %c8] : memref<8x96xf32, #tpu.memory_space<vmem>>, vector<8x8xf32>
    %58 = arith.index_cast %35 : i32 to index
    %c40 = arith.constant 40 : index
    %59 = vector.load %arg16[%58, %c40] : memref<8x96xf32, #tpu.memory_space<vmem>>, vector<8x8xf32>
    %60 = arith.index_cast %35 : i32 to index
    %c72 = arith.constant 72 : index
    %61 = vector.load %arg16[%60, %c72] : memref<8x96xf32, #tpu.memory_space<vmem>>, vector<8x8xf32>
    %cst_25 = arith.constant dense<0.000000e+00> : vector<8x8xf32>
    %62 = tpu.matmul %57, %59, %cst_25 {dimension_numbers = #tpu.dot_dimension_numbers<[1], [1], [0], [0], [0, 0, 1, 0], [], []>} : vector<8x8xf32>, vector<8x8xf32>, vector<8x8xf32> -> vector<8x8xf32>
    %cst_26 = arith.constant dense<0xFF800000> : vector<8xf32>
    %63 = vector.multi_reduction <maximumf>, %62, %cst_26 [1] : vector<8x8xf32> to vector<8xf32>
    %64 = vector.shape_cast %63 : vector<8xf32> to vector<8x1xf32>
    %65 = vector.broadcast %64 : vector<8x1xf32> to vector<8x8xf32>
    %66 = arith.subf %62, %65 : vector<8x8xf32>
    %67 = math.exp %66 : vector<8x8xf32>
    %cst_27 = arith.constant dense<0.000000e+00> : vector<8xf32>
    %68 = vector.multi_reduction <add>, %67, %cst_27 [1] : vector<8x8xf32> to vector<8xf32>
    %69 = vector.shape_cast %68 : vector<8xf32> to vector<8x1xf32>
    %70 = tpu.reciprocal %69 {approx = true} : vector<8x1xf32> -> vector<8x1xf32>
    %71 = vector.broadcast %70 : vector<8x1xf32> to vector<8x8xf32>
    %72 = arith.mulf %67, %71 : vector<8x8xf32>
    %cst_28 = arith.constant dense<0.000000e+00> : vector<8x8xf32>
    %73 = tpu.matmul %72, %61, %cst_28 {dimension_numbers = #tpu.dot_dimension_numbers<[1], [0], [0], [1], [0, 0, 1, 1], [], []>} : vector<8x8xf32>, vector<8x8xf32>, vector<8x8xf32> -> vector<8x8xf32>
    %74 = arith.index_cast %35 : i32 to index
    %c8_29 = arith.constant 8 : index
    %75 = vector.load %arg17[%74, %c8_29] : memref<8x32xf32, #tpu.memory_space<vmem>>, vector<8x8xf32>
    tpu.vector_store %arg17[%74, %c8_29], %73 {strides = array<i32>} : memref<8x32xf32, #tpu.memory_space<vmem>>, vector<8x8xf32>,
    %76 = arith.index_cast %35 : i32 to index
    %c16 = arith.constant 16 : index
    %77 = vector.load %arg16[%76, %c16] : memref<8x96xf32, #tpu.memory_space<vmem>>, vector<8x8xf32>
    %78 = arith.index_cast %35 : i32 to index
    %c48 = arith.constant 48 : index
    %79 = vector.load %arg16[%78, %c48] : memref<8x96xf32, #tpu.memory_space<vmem>>, vector<8x8xf32>
    %80 = arith.index_cast %35 : i32 to index
    %c80 = arith.constant 80 : index
    %81 = vector.load %arg16[%80, %c80] : memref<8x96xf32, #tpu.memory_space<vmem>>, vector<8x8xf32>
    %cst_30 = arith.constant dense<0.000000e+00> : vector<8x8xf32>
    %82 = tpu.matmul %77, %79, %cst_30 {dimension_numbers = #tpu.dot_dimension_numbers<[1], [1], [0], [0], [0, 0, 1, 0], [], []>} : vector<8x8xf32>, vector<8x8xf32>, vector<8x8xf32> -> vector<8x8xf32>
    %cst_31 = arith.constant dense<0xFF800000> : vector<8xf32>
    %83 = vector.multi_reduction <maximumf>, %82, %cst_31 [1] : vector<8x8xf32> to vector<8xf32>
    %84 = vector.shape_cast %83 : vector<8xf32> to vector<8x1xf32>
    %85 = vector.broadcast %84 : vector<8x1xf32> to vector<8x8xf32>
    %86 = arith.subf %82, %85 : vector<8x8xf32>
    %87 = math.exp %86 : vector<8x8xf32>
    %cst_32 = arith.constant dense<0.000000e+00> : vector<8xf32>
    %88 = vector.multi_reduction <add>, %87, %cst_32 [1] : vector<8x8xf32> to vector<8xf32>
    %89 = vector.shape_cast %88 : vector<8xf32> to vector<8x1xf32>
    %90 = tpu.reciprocal %89 {approx = true} : vector<8x1xf32> -> vector<8x1xf32>
    %91 = vector.broadcast %90 : vector<8x1xf32> to vector<8x8xf32>
    %92 = arith.mulf %87, %91 : vector<8x8xf32>
    %cst_33 = arith.constant dense<0.000000e+00> : vector<8x8xf32>
    %93 = tpu.matmul %92, %81, %cst_33 {dimension_numbers = #tpu.dot_dimension_numbers<[1], [0], [0], [1], [0, 0, 1, 1], [], []>} : vector<8x8xf32>, vector<8x8xf32>, vector<8x8xf32> -> vector<8x8xf32>
    %94 = arith.index_cast %35 : i32 to index
    %c16_34 = arith.constant 16 : index
    %95 = vector.load %arg17[%94, %c16_34] : memref<8x32xf32, #tpu.memory_space<vmem>>, vector<8x8xf32>
    tpu.vector_store %arg17[%94, %c16_34], %93 {strides = array<i32>} : memref<8x32xf32, #tpu.memory_space<vmem>>, vector<8x8xf32>,
    %96 = arith.index_cast %35 : i32 to index
    %c24 = arith.constant 24 : index
    %97 = vector.load %arg16[%96, %c24] : memref<8x96xf32, #tpu.memory_space<vmem>>, vector<8x8xf32>
    %98 = arith.index_cast %35 : i32 to index
    %c56 = arith.constant 56 : index
    %99 = vector.load %arg16[%98, %c56] : memref<8x96xf32, #tpu.memory_space<vmem>>, vector<8x8xf32>
    %100 = arith.index_cast %35 : i32 to index
    %c88 = arith.constant 88 : index
    %101 = vector.load %arg16[%100, %c88] : memref<8x96xf32, #tpu.memory_space<vmem>>, vector<8x8xf32>
    %cst_35 = arith.constant dense<0.000000e+00> : vector<8x8xf32>
    %102 = tpu.matmul %97, %99, %cst_35 {dimension_numbers = #tpu.dot_dimension_numbers<[1], [1], [0], [0], [0, 0, 1, 0], [], []>} : vector<8x8xf32>, vector<8x8xf32>, vector<8x8xf32> -> vector<8x8xf32>
    %cst_36 = arith.constant dense<0xFF800000> : vector<8xf32>
    %103 = vector.multi_reduction <maximumf>, %102, %cst_36 [1] : vector<8x8xf32> to vector<8xf32>
    %104 = vector.shape_cast %103 : vector<8xf32> to vector<8x1xf32>
    %105 = vector.broadcast %104 : vector<8x1xf32> to vector<8x8xf32>
    %106 = arith.subf %102, %105 : vector<8x8xf32>
    %107 = math.exp %106 : vector<8x8xf32>
    %cst_37 = arith.constant dense<0.000000e+00> : vector<8xf32>
    %108 = vector.multi_reduction <add>, %107, %cst_37 [1] : vector<8x8xf32> to vector<8xf32>
    %109 = vector.shape_cast %108 : vector<8xf32> to vector<8x1xf32>
    %110 = tpu.reciprocal %109 {approx = true} : vector<8x1xf32> -> vector<8x1xf32>
    %111 = vector.broadcast %110 : vector<8x1xf32> to vector<8x8xf32>
    %112 = arith.mulf %107, %111 : vector<8x8xf32>
    %cst_38 = arith.constant dense<0.000000e+00> : vector<8x8xf32>
    %113 = tpu.matmul %112, %101, %cst_38 {dimension_numbers = #tpu.dot_dimension_numbers<[1], [0], [0], [1], [0, 0, 1, 1], [], []>} : vector<8x8xf32>, vector<8x8xf32>, vector<8x8xf32> -> vector<8x8xf32>
    %114 = arith.index_cast %35 : i32 to index
    %c24_39 = arith.constant 24 : index
    %115 = vector.load %arg17[%114, %c24_39] : memref<8x32xf32, #tpu.memory_space<vmem>>, vector<8x8xf32>
    tpu.vector_store %arg17[%114, %c24_39], %113 {strides = array<i32>} : memref<8x32xf32, #tpu.memory_space<vmem>>, vector<8x8xf32>,
    %c1_i32 = arith.constant 1 : i32
    %c0_40 = arith.constant 0 : index
    %c0_41 = arith.constant 0 : index
    %116 = vector.load %arg17[%c0_40, %c0_41] : memref<8x32xf32, #tpu.memory_space<vmem>>, vector<8x32xf32>
    %c0_42 = arith.constant 0 : index
    %c0_43 = arith.constant 0 : index
    %c0_44 = arith.constant 0 : index
    %117 = vector.load %arg6[%c0_42, %c0_43, %c0_44] : memref<1x32x32xf32, #tpu.memory_space<vmem>>, vector<1x32x32xf32>
    %118 = vector.shape_cast %117 : vector<1x32x32xf32> to vector<32x32xf32>
    %cst_45 = arith.constant dense<0.000000e+00> : vector<8x32xf32>
    %119 = tpu.matmul %116, %118, %cst_45 {dimension_numbers = #tpu.dot_dimension_numbers<[1], [0], [0], [1], [0, 0, 1, 1], [], []>} : vector<8x32xf32>, vector<32x32xf32>, vector<8x32xf32> -> vector<8x32xf32>
    %c0_46 = arith.constant 0 : index
    %c0_47 = arith.constant 0 : index
    %120 = vector.load %arg15[%c0_46, %c0_47] : memref<8x32xf32, #tpu.memory_space<vmem>>, vector<8x32xf32>
    %121 = arith.addf %120, %119 : vector<8x32xf32>
    %c0_48 = arith.constant 0 : index
    %c0_49 = arith.constant 0 : index
    %c0_50 = arith.constant 0 : index
    %122 = vector.load %arg7[%c0_48, %c0_49, %c0_50] : memref<1x1x32xf32, #tpu.memory_space<vmem>>, vector<1x1x32xf32>
    %123 = vector.shape_cast %122 : vector<1x1x32xf32> to vector<1x32xf32>
    %124 = vector.broadcast %123 : vector<1x32xf32> to vector<8x32xf32>
    %125 = arith.addf %121, %124 : vector<8x32xf32>
    %c0_51 = arith.constant 0 : index
    %c0_52 = arith.constant 0 : index
    %126 = vector.load %arg15[%c0_51, %c0_52] : memref<8x32xf32, #tpu.memory_space<vmem>>, vector<8x32xf32>
    tpu.vector_store %arg15[%c0_51, %c0_52], %125 {strides = array<i32>} : memref<8x32xf32, #tpu.memory_space<vmem>>, vector<8x32xf32>,
    %c0_53 = arith.constant 0 : index
    %c0_54 = arith.constant 0 : index
    %127 = vector.load %arg15[%c0_53, %c0_54] : memref<8x32xf32, #tpu.memory_space<vmem>>, vector<8x32xf32>
    %c0_55 = arith.constant 0 : index
    %c0_56 = arith.constant 0 : index
    %c0_57 = arith.constant 0 : index
    %128 = vector.load %arg8[%c0_55, %c0_56, %c0_57] : memref<1x1x32xf32, #tpu.memory_space<vmem>>, vector<1x1x32xf32>
    %129 = vector.shape_cast %128 : vector<1x1x32xf32> to vector<1x32xf32>
    %c0_58 = arith.constant 0 : index
    %c0_59 = arith.constant 0 : index
    %c0_60 = arith.constant 0 : index
    %130 = vector.load %arg9[%c0_58, %c0_59, %c0_60] : memref<1x1x32xf32, #tpu.memory_space<vmem>>, vector<1x1x32xf32>
    %131 = vector.shape_cast %130 : vector<1x1x32xf32> to vector<1x32xf32>
    %cst_61 = arith.constant dense<0.000000e+00> : vector<8xf32>
    %132 = vector.multi_reduction <add>, %127, %cst_61 [1] : vector<8x32xf32> to vector<8xf32>
    %133 = vector.shape_cast %132 : vector<8xf32> to vector<8x1xf32>
    %cst_62 = arith.constant 3.200000e+01 : f32
    %134 = vector.broadcast %cst_62 : f32 to vector<8x1xf32>
    %135 = arith.divf %133, %134 : vector<8x1xf32>
    %136 = vector.broadcast %135 : vector<8x1xf32> to vector<8x32xf32>
    %137 = arith.subf %127, %136 : vector<8x32xf32>
    %138 = arith.mulf %137, %137 : vector<8x32xf32>
    %cst_63 = arith.constant dense<0.000000e+00> : vector<8xf32>
    %139 = vector.multi_reduction <add>, %138, %cst_63 [1] : vector<8x32xf32> to vector<8xf32>
    %140 = vector.shape_cast %139 : vector<8xf32> to vector<8x1xf32>
    %cst_64 = arith.constant 3.200000e+01 : f32
    %141 = vector.broadcast %cst_64 : f32 to vector<8x1xf32>
    %142 = arith.divf %140, %141 : vector<8x1xf32>
    %143 = vector.broadcast %135 : vector<8x1xf32> to vector<8x32xf32>
    %144 = arith.subf %127, %143 : vector<8x32xf32>
    %cst_65 = arith.constant 9.99999974E-6 : f32
    %145 = vector.broadcast %cst_65 : f32 to vector<8x1xf32>
    %146 = arith.addf %142, %145 : vector<8x1xf32>
    %147 = math.rsqrt %146 : vector<8x1xf32>
    %148 = vector.broadcast %147 : vector<8x1xf32> to vector<8x32xf32>
    %149 = arith.mulf %144, %148 : vector<8x32xf32>
    %150 = vector.broadcast %129 : vector<1x32xf32> to vector<8x32xf32>
    %151 = arith.mulf %149, %150 : vector<8x32xf32>
    %152 = vector.broadcast %131 : vector<1x32xf32> to vector<8x32xf32>
    %153 = arith.addf %151, %152 : vector<8x32xf32>
    %c0_66 = arith.constant 0 : index
    %c0_67 = arith.constant 0 : index
    %c0_68 = arith.constant 0 : index
    %154 = vector.load %arg10[%c0_66, %c0_67, %c0_68] : memref<1x32x64xf32, #tpu.memory_space<vmem>>, vector<1x32x64xf32>
    %155 = vector.shape_cast %154 : vector<1x32x64xf32> to vector<32x64xf32>
    %cst_69 = arith.constant dense<0.000000e+00> : vector<8x64xf32>
    %156 = tpu.matmul %153, %155, %cst_69 {dimension_numbers = #tpu.dot_dimension_numbers<[1], [0], [0], [1], [0, 0, 1, 1], [], []>} : vector<8x32xf32>, vector<32x64xf32>, vector<8x64xf32> -> vector<8x64xf32>
    %c0_70 = arith.constant 0 : index
    %c0_71 = arith.constant 0 : index
    %c0_72 = arith.constant 0 : index
    %157 = vector.load %arg11[%c0_70, %c0_71, %c0_72] : memref<1x1x64xf32, #tpu.memory_space<vmem>>, vector<1x1x64xf32>
    %158 = vector.shape_cast %157 : vector<1x1x64xf32> to vector<1x64xf32>
    %159 = vector.broadcast %158 : vector<1x64xf32> to vector<8x64xf32>
    %160 = arith.addf %156, %159 : vector<8x64xf32>
    %cst_73 = arith.constant 5.000000e-01 : f32
    %161 = vector.broadcast %cst_73 : f32 to vector<8x64xf32>
    %162 = arith.mulf %161, %160 : vector<8x64xf32>
    %cst_74 = arith.constant 0.707106769 : f32
    %163 = vector.broadcast %cst_74 : f32 to vector<8x64xf32>
    %164 = arith.mulf %160, %163 : vector<8x64xf32>
    %165 = math.erf %164 : vector<8x64xf32>
    %cst_75 = arith.constant 1.000000e+00 : f32
    %166 = vector.broadcast %cst_75 : f32 to vector<8x64xf32>
    %167 = arith.addf %166, %165 : vector<8x64xf32>
    %168 = arith.mulf %162, %167 : vector<8x64xf32>
    %c0_76 = arith.constant 0 : index
    %c0_77 = arith.constant 0 : index
    %c0_78 = arith.constant 0 : index
    %169 = vector.load %arg12[%c0_76, %c0_77, %c0_78] : memref<1x64x32xf32, #tpu.memory_space<vmem>>, vector<1x64x32xf32>
    %170 = vector.shape_cast %169 : vector<1x64x32xf32> to vector<64x32xf32>
    %cst_79 = arith.constant dense<0.000000e+00> : vector<8x32xf32>
    %171 = tpu.matmul %168, %170, %cst_79 {dimension_numbers = #tpu.dot_dimension_numbers<[1], [0], [0], [1], [0, 0, 1, 1], [], []>} : vector<8x64xf32>, vector<64x32xf32>, vector<8x32xf32> -> vector<8x32xf32>
    %c0_80 = arith.constant 0 : index
    %c0_81 = arith.constant 0 : index
    %c0_82 = arith.constant 0 : index
    %172 = vector.load %arg13[%c0_80, %c0_81, %c0_82] : memref<1x1x32xf32, #tpu.memory_space<vmem>>, vector<1x1x32xf32>
    %173 = vector.shape_cast %172 : vector<1x1x32xf32> to vector<1x32xf32>
    %174 = vector.broadcast %173 : vector<1x32xf32> to vector<8x32xf32>
    %175 = arith.addf %171, %174 : vector<8x32xf32>
    %176 = arith.addf %127, %175 : vector<8x32xf32>
    %c0_83 = arith.constant 0 : index
    %c0_84 = arith.constant 0 : index
    %177 = vector.load %arg15[%c0_83, %c0_84] : memref<8x32xf32, #tpu.memory_space<vmem>>, vector<8x32xf32>
    tpu.vector_store %arg15[%c0_83, %c0_84], %176 {strides = array<i32>} : memref<8x32xf32, #tpu.memory_space<vmem>>, vector<8x32xf32>,
    %c1_i32_85 = arith.constant 1 : i32
    %178 = arith.cmpi eq, %arg1, %c1_i32_85 : i32
    %179 = arith.extui %178 : i1 to i32
    %c0_i32_86 = arith.constant 0 : i32
    %180 = arith.cmpi ne, %179, %c0_i32_86 : i32
    scf.if %180 {
      %c0_87 = arith.constant 0 : index
      %c0_88 = arith.constant 0 : index
      %181 = vector.load %arg15[%c0_87, %c0_88] : memref<8x32xf32, #tpu.memory_space<vmem>>, vector<8x32xf32>
      %c0_89 = arith.constant 0 : index
      %c0_90 = arith.constant 0 : index
      %182 = vector.load %arg14[%c0_89, %c0_90] : memref<8x32xf32, #tpu.memory_space<vmem>>, vector<8x32xf32>
      tpu.vector_store %arg14[%c0_89, %c0_90], %181 {strides = array<i32>} : memref<8x32xf32, #tpu.memory_space<vmem>>, vector<8x32xf32>,
    } else {
    }
    return
  }
  func.func @transform_0(%arg0: i32, %arg1: i32) -> (i32, i32) {
    %c0_i32 = arith.constant 0 : i32
    %c0_i32_0 = arith.constant 0 : i32
    return %arg0, %c0_i32 : i32, i32
  }
  func.func @transform_1(%arg0: i32, %arg1: i32) -> (i32, i32, i32) {
    %c0_i32 = arith.constant 0 : i32
    %c0_i32_0 = arith.constant 0 : i32
    %c0_i32_1 = arith.constant 0 : i32
    return %arg1, %c0_i32, %c0_i32_0 : i32, i32, i32
  }
  func.func @transform_2(%arg0: i32, %arg1: i32) -> (i32, i32, i32) {
    %c0_i32 = arith.constant 0 : i32
    %c0_i32_0 = arith.constant 0 : i32
    %c0_i32_1 = arith.constant 0 : i32
    return %arg1, %c0_i32, %c0_i32_0 : i32, i32, i32
  }
  func.func @transform_3(%arg0: i32, %arg1: i32) -> (i32, i32, i32) {
    %c0_i32 = arith.constant 0 : i32
    %c0_i32_0 = arith.constant 0 : i32
    %c0_i32_1 = arith.constant 0 : i32
    return %arg1, %c0_i32, %c0_i32_0 : i32, i32, i32
  }
  func.func @transform_4(%arg0: i32, %arg1: i32) -> (i32, i32, i32) {
    %c0_i32 = arith.constant 0 : i32
    %c0_i32_0 = arith.constant 0 : i32
    %c0_i32_1 = arith.constant 0 : i32
    return %arg1, %c0_i32, %c0_i32_0 : i32, i32, i32
  }
  func.func @transform_5(%arg0: i32, %arg1: i32) -> (i32, i32, i32) {
    %c0_i32 = arith.constant 0 : i32
    %c0_i32_0 = arith.constant 0 : i32
    %c0_i32_1 = arith.constant 0 : i32
    return %arg1, %c0_i32, %c0_i32_0 : i32, i32, i32
  }
  func.func @transform_6(%arg0: i32, %arg1: i32) -> (i32, i32, i32) {
    %c0_i32 = arith.constant 0 : i32
    %c0_i32_0 = arith.constant 0 : i32
    %c0_i32_1 = arith.constant 0 : i32
    return %arg1, %c0_i32, %c0_i32_0 : i32, i32, i32
  }
  func.func @transform_7(%arg0: i32, %arg1: i32) -> (i32, i32, i32) {
    %c0_i32 = arith.constant 0 : i32
    %c0_i32_0 = arith.constant 0 : i32
    %c0_i32_1 = arith.constant 0 : i32
    return %arg1, %c0_i32, %c0_i32_0 : i32, i32, i32
  }
  func.func @transform_8(%arg0: i32, %arg1: i32) -> (i32, i32, i32) {
    %c0_i32 = arith.constant 0 : i32
    %c0_i32_0 = arith.constant 0 : i32
    %c0_i32_1 = arith.constant 0 : i32
    return %arg1, %c0_i32, %c0_i32_0 : i32, i32, i32
  }
  func.func @transform_9(%arg0: i32, %arg1: i32) -> (i32, i32, i32) {
    %c0_i32 = arith.constant 0 : i32
    %c0_i32_0 = arith.constant 0 : i32
    %c0_i32_1 = arith.constant 0 : i32
    return %arg1, %c0_i32, %c0_i32_0 : i32, i32, i32
  }
  func.func @transform_10(%arg0: i32, %arg1: i32) -> (i32, i32, i32) {
    %c0_i32 = arith.constant 0 : i32
    %c0_i32_0 = arith.constant 0 : i32
    %c0_i32_1 = arith.constant 0 : i32
    return %arg1, %c0_i32, %c0_i32_0 : i32, i32, i32
  }
  func.func @transform_11(%arg0: i32, %arg1: i32) -> (i32, i32, i32) {
    %c0_i32 = arith.constant 0 : i32
    %c0_i32_0 = arith.constant 0 : i32
    %c0_i32_1 = arith.constant 0 : i32
    return %arg1, %c0_i32, %c0_i32_0 : i32, i32, i32
  }
  func.func @transform_12(%arg0: i32, %arg1: i32) -> (i32, i32) {
    %c0_i32 = arith.constant 0 : i32
    %c0_i32_0 = arith.constant 0 : i32
    return %arg0, %c0_i32 : i32, i32
  }
}

</mosaic_0001>

<bundles_post_ra>
// kernel: tpu_custom_call.1
= control target key start
LH: loop header
LB: loop body
LE: loop exit
PB: predicated region body
PF: predicated region fallthrough
CT: control target
= control target key end

     0   :  { %s2072_s0 = inlined_call_operand.hbm [shape: f32[16,32], index: 0, kind: input, shape index: {}, may-alias: {0,12}]   ;;  %s2073_s1 = inlined_call_operand.vmem [shape: f32[2,1,32], index: 1, kind: input, shape index: {}]   ;;  %s2074_s2 = inlined_call_operand.vmem [shape: f32[2,1,32], index: 2, kind: input, shape index: {}]   ;;  %s2075_s3 = inlined_call_operand.vmem [shape: f32[2,32,96], index: 3, kind: input, shape index: {}]   ;;  %s2076_s4 = inlined_call_operand.vmem [shape: f32[2,32,32], index: 4, kind: input, shape index: {}]   ;;  %s2077_s5 = inlined_call_operand.vmem [shape: f32[2,1,32], index: 5, kind: input, shape index: {}]   ;;  %s2078_s6 = inlined_call_operand.vmem [shape: f32[2,1,32], index: 6, kind: input, shape index: {}]   ;;  %s2079_s7 = inlined_call_operand.vmem [shape: f32[2,1,32], index: 7, kind: input, shape index: {}]   ;;  %s2080_s8 = inlined_call_operand.vmem [shape: f32[2,32,64], index: 8, kind: input, shape index: {}]   ;;  %s2081_s9 = inlined_call_operand.vmem [shape: f32[2,1,64], index: 9, kind: input, shape index: {}]   ;;  %s2082_s10 = inlined_call_operand.vmem [shape: f32[2,64,32], index: 10, kind: input, shape index: {}]   ;;  %s2083_s11 = inlined_call_operand.vmem [shape: f32[2,1,32], index: 11, kind: input, shape index: {}]   ;;  %s2084_s12 = inlined_call_operand.hbm [shape: f32[16,32], index: 12, kind: output, shape index: {}, may-alias: {0,12}]  }
   0x1   :  { %2098 = sst [smem:[#allocation24_spill]] %s2072_s0 }
   0x2   :  { %2099 = sst [smem:[#allocation25_spill]] %s2075_s3 }
   0x3   :  { %2100 = sst [smem:[#allocation26_spill]] %s2076_s4 }
   0x4   :  { %2101 = sst [smem:[#allocation27_spill]] %s2078_s6 }
   0x5   :  { %2102 = sst [smem:[#allocation28_spill]] %s2082_s10 }
   0x6   :  { %2103 = sst [smem:[#allocation29_spill]] %s2083_s11 }
   0x7   :  { %2104 = sst [smem:[#allocation30_spill]] %s2084_s12 }
   0x8   :  { %17 = vsyncpa [#allocation6], 0 }
   0x9   :  { %19 = vsyncpa [#allocation6 + $0x1], 0 }
   0xa   :  { %20 = vsyncpa [#allocation7], 0 }
   0xb   :  { %22 = vsyncpa [#allocation7 + $0x1], 0  ;;  %s1758_s21 = smov 0   ;;  %s1760_s22 = smov 0  }
   0xc   :  { %s1762_s23 = smov 0   ;;  %s1764_s24 = smov 0  }
   0xd   :  { %s1766_s25 = smov 0   ;;  %s1768_s26 = smov 0  }
   0xe   :  { %s1770_s27 = smov 0   ;;  %s1772_s28 = smov 0  }
   0xf LB: > { %2105 = sst [smem:[#allocation11_spill]] %s1648_s21  ;;  %s1380_s29 = sadd.s32 4294967295, %s1676_s28   ;;  %s1676_s28 = sphi %s1772_s28, %s28_s28   ;;  %s1672_s27 = sphi %s1770_s27, %s2148_s27   ;;  %s1668_s26 = sphi %s1768_s26, %s2147_s26   ;;  %s1664_s25 = sphi %s1766_s25, %s2146_s25   ;;  %s1660_s24 = sphi %s1764_s24, %s2145_s24   ;;  %s1656_s23 = sphi %s1762_s23, %s2144_s23   ;;  %s1652_s22 = sphi %s1760_s22, %s2143_s22   ;;  %s1648_s21 = sphi %s1758_s21, %s2142_s21  }
  0x10   : > { %2106 = sst [smem:[#allocation12_spill]] %s1652_s22  ;;  %s1381_s30 = sadd.s32 4294967294, %s1676_s28  }
  0x11   : > { %2107 = sst [smem:[#allocation13_spill]] %s1656_s23  ;;  %s37_s13 = sadd.s32 1, %s1668_s26 }
  0x12   : > { %2108 = sst [smem:[#allocation14_spill]] %s1664_s25  ;;  %s40_s14 = sadd.s32 1, %s1672_s27 }
  0x13   : > { %2109 = sst [smem:[#allocation15_spill]] %s1668_s26  ;;  %p38_p0 = scmp.ge.s32.totalorder %s37_s13, 2 }
  0x14   : > { %2110 = sst [smem:[#allocation16_spill]] %s1672_s27  ;;  %s47_s15 = sadd.s32 1, %s1656_s23 }
  0x15   : > { %2111 = sst [smem:[#allocation17_spill]] %s1676_s28  ;;  %p54_p1 = scmp.ne.s32.totalorder %s1656_s23, %s1652_s22 }
  0x16   : > { %p55_p2 = scmp.eq.s32.totalorder %s1676_s28, 0  ;;  %s2150_s13 = smov (%p38_p0, %s37_s13), 0 }
  0x17   : > { %2112 = sst [smem:[#allocation18_spill]] %s2150_s13  ;;  %s2152_s14 = smov (!%p38_p0, %s40_s14), %s1672_s27 }
  0x18   : > { %p1809_p3 = por %p55_p2, %p54_p1  ;;  %p60_p4 = scmp.ne.s32.totalorder %s1652_s22, %s1648_s21 }
  0x19   : > { %p42_p5 = scmp.ge.s32.totalorder %s2152_s14, 2  ;;  %p61_p6 = scmp.eq.s32.totalorder %s1380_s29, 0 }
  0x1a   : > { %p370_p7 = scmp.eq.s32.totalorder %s1380_s29, 3  ;;  %p376_p8 = scmp.eq.s32.totalorder %s1381_s30, 3 }
  0x1b   : > { %s2154_s14 = smov (%p42_p5, %s2152_s14), 0  ;;  %p1817_p9 = por %p61_p6, %p60_p4 }
  0x1c   : > { %2114 = sst [smem:[#allocation19_spill]] %s2154_s14  ;;  %p1821_p10 = por %p370_p7, %p54_p1 }
  0x1d   : > { %s44_s19 = ssub.s32 %s1672_s27, %s2154_s14  ;;  %p1827_p11 = por %p376_p8, %p60_p4 }
  0x1e   : > { %s2116_s18 = scalar_select %p1821_p10, 1, 0 }
  0x1f   : > { %s2118_s20 = scalar_select %p1827_p11, 1, 0 }
  0x20   : > { %2117 = sst [smem:[#allocation20_spill]] %s2116_s18  ;;  %p45_p12 = scmp.eq.s32.totalorder %s44_s19, 0 }
  0x21   : > { %2119 = sst [smem:[#allocation21_spill]] %s2118_s20  ;;  %p1436_p13 = scmp.lt.s32.totalorder %s1676_s28, 4 }
  0x22   : > { %s396_s29 = sand.u32 1, %s1656_s23   ;;  %s1385_s26 = sshll.u32 %s1672_s27, 3 }
  0x23   : > { %s1834_s30 = scalar_select %p45_p12, %s1656_s23, %s47_s15  }
  0x24   : > { %s1384_s13 = sshll.u32 %s396_s29, 3  ;;  %s2121_s0 = sld [smem:[#allocation24_spill]] }
  0x25   : > { %2120 = sst [smem:[#allocation22_spill]] %s1834_s30  ;;  %s400_s10 = scalar_lea.vmem [#allocation5], %s1384_s13 }
  0x26   : > { %s408_s18 = sshll.u32 %s400_s10, 4  ;;  %p1429_p0 = pnand %p1436_p13, %p1809_p3  ;;  %s409_s18 = int_to_ptr.vmem [resolvable:$true] %s408_s18 }
  0x27   : > { %p1386_p1 = scmp.ge.s32.totalorder %s1676_s28, 1  ;;  %p487_p2 = scmp.lt.s32.totalorder %s1676_s28, 5 }
  0x28   : > { %s397_s19 = scalar_lea.sflag [#allocation6], %s396_s29 }
  0x29   : > { %p488_p4 = pnand %p1386_p1, %p487_p2 }
  0x2a   : > { %s404_s25 = scalar_lea.hbm %s2121_s0, %s1385_s26 }
  0x2b   : > { %s406_s11 = sshll.u32 %s404_s25, 4  ;;  %491 = sbr.rel (%p488_p4) target bundleno = 2395 (0x95b), region = 68  ;;  %s407_s11 = int_to_ptr.hbm [resolvable:$true] %s406_s11 }
  0x2c   : > { %1431 = dma.hbm_to_vmem [thread:$0]  (!%p1429_p0), %s407_s11, 128, %s409_s18, %s397_s19  }
  0x30   : > { %s1845_s15 = sand.u32 1, %s1652_s22  }
  0x31   : > { %2122 = sst [smem:[#allocation23_spill]] %s1845_s15  ;;  %s1387_s12 = sshll.u32 %s1845_s15, 3 }
  0x32   : > { %s494_s21 = scalar_lea.sflag [#allocation6], %s1845_s15  ;;  %s497_s10 = scalar_lea.vmem [#allocation5], %s1387_s12 }
  0x33   : > { %1639 = dma.done.wait (%p1817_p9), %s494_s21, 128  }
  0x34   : > { %1641 = vsyncadd (%p1817_p9), %s494_s21, 4294967168  ;;  %p580_p3 = scmp.lt.s32.totalorder %s1660_s24, 1  ;;  %s2123_s3 = sld [smem:[#allocation25_spill]] }
  0x35   : > { %s2124_s4 = sld [smem:[#allocation26_spill]]  ;;  %s1907_s18 = scalar_lea.vmem [#allocation8], %s1387_s12 }
  0x36   : > { %s1855_s11 = scalar_select %p580_p3, %s1660_s24, 1 }
  0x37   : > { %s2126_s28 = sld [smem:[#allocation29_spill]]  ;;  %p1397_p5 = scmp.ne.s32.totalorder %s1660_s24, 0 }
  0x38   : > { %s1420_s29 = sshll.u32 %s1855_s11, 5  ;;  %s604_s20 = scalar_lea.vmem %s2079_s7, %s1855_s11 }
  0x39   : > { %s1891_s0 = scalar_lea.vmem %s2080_s8, %s1420_s29  ;;  %s1423_s27 = sshll.u32 %s1855_s11, 6 }
  0x3a   : > { %s1873_s26 = scalar_lea.vmem %s2123_s3, %s1420_s29  ;;  %s612_s3 = scalar_lea.vmem %s2081_s9, %s1855_s11 }
  0x3b   : > { %s1878_s23 = scalar_lea.vmem %s2124_s4, %s1420_s29  ;;  %s2127_s16 = sld [smem:[#allocation28_spill]] }
  0x3d   : > { %s620_s15 = scalar_lea.vmem %s2126_s28, %s1855_s11  ;;  %624 = sbr.rel (%p1397_p5) target bundleno = 68 (0x44), region = 76 }
  0x41   : > { %s1905_s6 = scalar_lea.vmem %s2127_s16, %s1423_s27 }
  0x42   : > { %v625_v0 = vld [vmem:[%s497_s10] sm:$0xff]  ;;  %vm626_vm0 = vcmask 261120  }
  0x43   : > { %627 = vst.msk [vmem:[#allocation2] sm:$0xff] %vm626_vm0, %v625_v0 }
  0x44 PF: > { %vm631_vm1 = vcmask 261120   ;;  %v1678_v3 = vmov 32.0   ;;  %v672_v15 = vld [vmem:[%s1873_s26 + $0x18] sm:$0xff]  ;;  %v671_v16 = vld [vmem:[%s1873_s26 + $0x10] sm:$0xff]  ;;  %v670_v17 = vld [vmem:[%s1873_s26 + $0x8] sm:$0xff]  ;;  %s2128_s12 = scalar_lea.vmem %s2073_s1, %s1855_s11  ;;  %vm696_vm6 = vcmask 785408  }
  0x45   : > { %1524 = vrcp.f32 %v1678_v3  ;;  %688 = vmatpush.msra.mxu0 %v672_v15  ;;  %v669_v18 = vld [vmem:[%s1873_s26] sm:$0xff]  ;;  %s2129_s26 = scalar_lea.vmem %s2074_s2, %s1855_s11  ;;  %s1679_s16 = smov 120   ;;  %vm702_vm7 = vcmask 64512   ;;  %vm836_vm8 = vcmask 130112   ;;  %vm909_vm9 = vcmask 195712  }
  0x46   : > { %v1517_v28 = vld [vmem:[%s2128_s12] ss:$0 sm:$0xff]  ;;  %s1680_s17 = smov 64   ;;  %s1681_s19 = smov 96   ;;  %vm982_vm10 = vcmask 261312  }
  0x47   : > { %689 = vmatpush.msra.mxu0 %v671_v16  ;;  %v1518_v31 = vld [vmem:[%s2129_s26] ss:$0 sm:$0xff]  ;;  %s1682_s21 = smov 72   ;;  %s1683_s14 = smov 88  }
  0x48   : > { %s1684_s25 = smov 56   ;;  %s1685_s27 = smov 80  }
  0x49   : > { %690 = vmatpush.msra.mxu0 %v670_v17  ;;  %s1686_s30 = smov 104   ;;  %s1687_s22 = smov 112  }
  0x4a   : > { %v1910_v1 = vld [vmem:[#allocation2] sm:$0xff]  ;;  %s1688_s13 = smov 48   ;;  %s1689_s4 = smov 8  }
  0x4b   : > { %v632_v2 = vsel %vm631_vm1, %v1910_v1, 0.0  ;;  %v1525_v4 = vpop.eup %1524  ;;  %691 = vmatpush.msra.mxu0 %v669_v18  ;;  %s1690_s28 = smov 40   ;;  %s1691_s12 = smov 16  }
  0x4c   : > { %633 = vadd.xlane.f32.xlu0 %v632_v2  ;;  %v636_v5 = vmul.f32 32.0, %v1525_v4  ;;  %vm640_vm2 = vweird.f32 %v1525_v4  ;;  %s1692_s10 = smov 24   ;;  %p1415_p6 = scmp.ne.s32.totalorder %s1660_s24, 1 }
  0x4e   : > { %v637_v6 = vsub.f32 1.0, %v636_v5 }
  0x50   : > { %v638_v7 = vmul.f32 %v1525_v4, %v637_v6 }
  0x52   : > { %v639_v8 = vadd.f32 %v1525_v4, %v638_v7 }
  0x54   : > { %v1914_v9 = vsel %vm640_vm2, %v1525_v4, %v639_v8 }
  0xbf   : > { %v634_v10 = vpop.xlane.xlu0 %633 }
  0xc0   : > { %v642_v11 = vmul.f32 %v1914_v9, %v634_v10 }
  0xc2   : > { %v643_v12 = vsub.f32 %v1910_v1, %v642_v11 }
  0xc4   : > { %v644_v13 = vmul.f32 %v643_v12, %v643_v12 }
  0xc6   : > { %v645_v14 = vsel %vm631_vm1, %v644_v13, 0.0 }
  0xc7   : > { %646 = vadd.xlane.f32.xlu0 %v645_v14 }
 0x13a   : > { %v647_v19 = vpop.xlane.xlu0 %646 }
 0x13b   : > { %v648_v20 = vmul.f32 %v647_v19, %v1914_v9 }
 0x13d   : > { %v649_v21 = vadd.f32 1e-05, %v648_v20 }
 0x13f   : > { %1526 = vrsqrt.f32 %v649_v21  ;;  %vm656_vm4 = vweird.f32 %v649_v21 }
 0x145   : > { %v1527_v22 = vpop.eup %1526 }
 0x146   : > { %v651_v23 = vmul.f32 %v1527_v22, %v649_v21  ;;  %vm657_vm3 = vweird.f32 %v1527_v22 }
 0x147   : > { %vm658_vm5 = vmor %vm656_vm4, %vm657_vm3  ;;  %vm1140_vm3 = vcmask 523264  }
 0x148   : > { %v652_v24 = vmul.f32 %v1527_v22, %v651_v23 }
 0x14a   : > { %v653_v25 = vmul.f32 0.5, %v652_v24 }
 0x14c   : > { %v654_v26 = vsub.f32 1.5, %v653_v25 }
 0x14e   : > { %v655_v27 = vmul.f32 %v1527_v22, %v654_v26 }
 0x150   : > { %v659_v29 = vsel %vm658_vm5, %v1527_v22, %v655_v27 }
 0x151   : > { %v660_v30 = vmul.f32 %v659_v29, %v643_v12 }
 0x153   : > { %v664_v32 = vmul.f32 %v1517_v28, %v660_v30  ;;  %v988_v30 = vld [vmem:[%s1878_s23 + $0x18] sm:$0xff] }
 0x155   : > { %v668_v33 = vadd.f32 %v1518_v31, %v664_v32  ;;  %v987_v31 = vld [vmem:[%s1878_s23 + $0x10] sm:$0xff]  ;;  %v986_v32 = vld [vmem:[%s1878_s23 + $0x8] sm:$0xff] }
 0x157   : > { %1398 = vmatmul.msk.f32.vlgmr.msra.gmra.mxu0 %vm631_vm1, %v668_v33  ;;  %v985_v33 = vld [vmem:[%s1878_s23] sm:$0xff] }
 0x1d4   : > { %v693_v34 = vpop.f32.mrf.mxu0 }
 0x1d5   : > { %697 = vst.msk [vmem:[#allocation3] sm:$0xff] %vm696_vm6, %v693_v34 }
 0x1dc   : > { %v1935_v35 = vld [vmem:[#allocation3] sm:$0xff] }
 0x1dd   : > { %767 = vrot.lane.b32.xlu2 %v1935_v35, %s1679_s16  ;;  %738 = vrot.lane.b32.xlu0 %v1935_v35, %s1680_s17  ;;  %s2130_s16 = scalar_lea.vmem %s2077_s5, %s1855_s11  ;;  %s2131_s17 = sld [smem:[#allocation27_spill]] }
 0x1de   : > { %700 = vrot.lane.b32.xlu1 %v1935_v35, %s1681_s19 }
 0x1e3   : > { %s2132_s19 = scalar_lea.vmem %s2131_s17, %s1855_s11 }
 0x1e5   : > { %915 = vrot.lane.b32.xlu0 %v1935_v35, %s1682_s21 }
 0x1e6   : > { %769 = vrot.lane.b32.xlu1 %v1935_v35, %s1683_s14 }
 0x237   : > { %v768_v39 = vpop.permute.xlu2 %767 }
 0x24f   : > { %v739_v36 = vpop.permute.xlu0 %738 }
 0x250   : > { %v701_v37 = vpop.permute.xlu1 %700  ;;  %759 = vmatpush.msra.mxu2 %v739_v36 }
 0x251   : > { %1399 = vmatpush.xpose.msk.msra.mxu1 %vm702_vm7, %v701_v37  ;;  %v1519_v37 = vld [vmem:[%s2130_s16] ss:$0 sm:$0xff] }
 0x254   : > { %1400 = vmatmul.msk.f32.vlgmr.msra.gmra.mxu1 %vm702_vm7, %v1935_v35 }
 0x257   : > { %v916_v47 = vpop.permute.xlu0 %915 }
 0x258   : > { %v770_v38 = vpop.permute.xlu1 %769 }
 0x259   : > { %1402 = vmatpush.xpose.msk.msra.mxu3 %vm702_vm7, %v770_v38 }
 0x25c   : > { %1403 = vmatmul.msk.f32.vlgmr.msra.gmra.mxu3 %vm702_vm7, %v768_v39 }
 0x2d1   : > { %v724_v40 = vpop.f32.mrf.mxu1 }
 0x2d2   : > { %v727_v41 = vsel %vm702_vm7, %v724_v40, -inf }
 0x2d3   : > { %728 = vmax.xlane.f32.xlu2 %v727_v41 }
 0x2df   : > { %v792_v42 = vpop.f32.mrf.mxu3 }
 0x2e0   : > { %v795_v43 = vsel %vm702_vm7, %v792_v42, -inf }
 0x2e1   : > { %796 = vmax.xlane.f32.xlu0 %v795_v43 }
 0x2eb   : > { %806 = vrot.lane.b32.xlu2 %v1935_v35, %s1684_s25 }
 0x2f5   : > { %842 = vrot.lane.b32.xlu0 %v1935_v35, %s1685_s27 }
 0x346   : > { %v729_v44 = vpop.xlane.xlu2 %728 }
 0x347   : > { %v730_v45 = vsub.f32 %v724_v40, %v729_v44 }
 0x349   : > { %v731_v46 = vmul.f32 1.442695, %v730_v45 }
 0x34b   : > { %1528 = vpow2.f32 %v731_v46 }
 0x34e   : > { %v807_v48 = vpop.permute.xlu2 %806 }
 0x34f   : > { %827 = vmatpush.msrb.mxu2 %v807_v48  ;;  %v1055_v48 = vld [vmem:[%s1891_s0 + $0x10] sm:$0xff] }
 0x351   : > { %v1529_v49 = vpop.eup %1528 }
 0x352   : > { %v733_v50 = vsel %vm702_vm7, %v1529_v49, 0.0 }
 0x353   : > { %734 = vadd.xlane.f32.xlu1 %v733_v50  ;;  %v1053_v50 = vld [vmem:[%s1891_s0] sm:$0xff] }
 0x354   : > { %v797_v51 = vpop.xlane.xlu0 %796 }
 0x355   : > { %v798_v52 = vsub.f32 %v792_v42, %v797_v51 }
 0x357   : > { %v799_v53 = vmul.f32 1.442695, %v798_v52 }
 0x359   : > { %1530 = vpow2.f32 %v799_v53 }
 0x35f   : > { %v1531_v54 = vpop.eup %1530 }
 0x360   : > { %v801_v55 = vsel %vm702_vm7, %v1531_v54, 0.0 }
 0x361   : > { %802 = vadd.xlane.f32.xlu0 %v801_v55 }
 0x367   : > { %v843_v56 = vpop.permute.xlu0 %842 }
 0x368   : > { %1405 = vmatpush.xpose.msk.msrb.mxu1 %vm702_vm7, %v843_v56 }
 0x36c   : > { %913 = vrot.lane.b32.xlu1 %v1935_v35, %s1686_s30  ;;  %1004 = vmatpush.msra.mxu1 %v988_v30 }
 0x36e   : > { %1005 = vmatpush.msra.mxu1 %v987_v31 }
 0x370   : > { %1006 = vmatpush.msra.mxu1 %v986_v32 }
 0x372   : > { %1007 = vmatpush.msra.mxu1 %v985_v33 }
 0x375   : > { %840 = vrot.lane.b32.xlu0 %v1935_v35, %s1687_s22 }
 0x3c6   : > { %v735_v57 = vpop.xlane.xlu1 %734 }
 0x3c7   : > { %1532 = vrcp.f32 %v735_v57 }
 0x3cd   : > { %v1533_v58 = vpop.eup %1532 }
 0x3ce   : > { %v737_v59 = vmul.f32 %v1533_v58, %v1529_v49  ;;  %v1054_v49 = vld [vmem:[%s1891_s0 + $0x8] sm:$0xff] }
 0x3d0   : > { %1401 = vmatmul.msk.f32.vlgmr.msra.gmra.mxu2 %vm702_vm7, %v737_v59 }
 0x3d1   : > { %1408 = vmatpush.xpose.msk.msra.mxu2 %vm702_vm7, %v916_v47 }
 0x3d4   : > { %v803_v60 = vpop.xlane.xlu0 %802 }
 0x3d5   : > { %1534 = vrcp.f32 %v803_v60  ;;  %v1520_v60 = vld [vmem:[%s2132_s19] ss:$0 sm:$0xff] }
 0x3db   : > { %v1535_v61 = vpop.eup %1534 }
 0x3dc   : > { %v805_v62 = vmul.f32 %v1535_v61, %v1531_v54 }
 0x3de   : > { %1404 = vmatmul.msk.f32.vlgmr.msrb.gmra.mxu2 %vm702_vm7, %v805_v62  ;;  %v914_v63 = vpop.permute.xlu1 %913  ;;  %v1521_v62 = vld [vmem:[%s604_s20] ss:$0 sm:$0xff] }
 0x3e6   : > { %1409 = vmatmul.msk.f32.vlgmr.msra.gmra.mxu2 %vm702_vm7, %v914_v63 }
 0x3e7   : > { %v841_v0 = vpop.permute.xlu0 %840 }
 0x3e8   : > { %1406 = vmatmul.msk.f32.vlgmr.msrb.gmra.mxu1 %vm702_vm7, %v841_v0 }
 0x453   : > { %v761_v2 = vpop.f32.mrf.mxu2 }
 0x454   : > { %764 = vst.msk [vmem:[#allocation4] sm:$0xff] %vm702_vm7, %v761_v2  ;;  %v1522_v2 = vld [vmem:[%s612_s3] ss:$0 sm:$0xff] }
 0x461   : > { %v829_v3 = vpop.f32.mrf.mxu2 }
 0x465   : > { %v865_v4 = vpop.f32.mrf.mxu1 }
 0x466   : > { %v868_v5 = vsel %vm702_vm7, %v865_v4, -inf }
 0x467   : > { %869 = vmax.xlane.f32.xlu2 %v868_v5 }
 0x469   : > { %v938_v6 = vpop.f32.mrf.mxu2 }
 0x46a   : > { %v941_v7 = vsel %vm702_vm7, %v938_v6, -inf }
 0x46b   : > { %942 = vmax.xlane.f32.xlu0 %v941_v7 }
 0x47f   : > { %879 = vrot.lane.b32.xlu0 %v1935_v35, %s1688_s13 }
 0x4da   : > { %v870_v8 = vpop.xlane.xlu2 %869 }
 0x4db   : > { %v871_v10 = vsub.f32 %v865_v4, %v870_v8  ;;  %v1135_v8 = vld [vmem:[%s1905_s6 + $0x38] sm:$0xff] }
 0x4dc   : > { %1152 = vmatpush.msrb.mxu0 %v1135_v8 }
 0x4dd   : > { %v872_v11 = vmul.f32 1.442695, %v871_v10 }
 0x4de   : > { %v943_v12 = vpop.xlane.xlu0 %942 }
 0x4df   : > { %1536 = vpow2.f32 %v872_v11  ;;  %v944_v13 = vsub.f32 %v938_v6, %v943_v12  ;;  %v1134_v12 = vld [vmem:[%s1905_s6 + $0x30] sm:$0xff] }
 0x4e0   : > { %1153 = vmatpush.msrb.mxu0 %v1134_v12 }
 0x4e1   : > { %v945_v14 = vmul.f32 1.442695, %v944_v13 }
 0x4e3   : > { %1538 = vpow2.f32 %v945_v14 }
 0x4e5   : > { %v1537_v15 = vpop.eup %1536 }
 0x4e6   : > { %v874_v16 = vsel %vm702_vm7, %v1537_v15, 0.0 }
 0x4e7   : > { %875 = vadd.xlane.f32.xlu1 %v874_v16 }
 0x4e9   : > { %v1539_v17 = vpop.eup %1538 }
 0x4ea   : > { %v947_v18 = vsel %vm702_vm7, %v1539_v17, 0.0 }
 0x4eb   : > { %948 = vadd.xlane.f32.xlu2 %v947_v18  ;;  %v1132_v18 = vld [vmem:[%s1905_s6 + $0x20] sm:$0xff] }
 0x4f1   : > { %v880_v19 = vpop.permute.xlu0 %879 }
 0x4f2   : > { %900 = vmatpush.msrb.mxu3 %v880_v19 }
 0x500   : > { %833 = vrot.lane.b32.xlu1 %v829_v3, %s1689_s4 }
 0x503   : > { %952 = vrot.lane.b32.xlu2 %v1935_v35, %s1690_s28 }
 0x55a   : > { %v876_v20 = vpop.xlane.xlu1 %875 }
 0x55b   : > { %1540 = vrcp.f32 %v876_v20  ;;  %v1131_v20 = vld [vmem:[%s1905_s6 + $0x18] sm:$0xff] }
 0x55e   : > { %v949_v21 = vpop.xlane.xlu2 %948 }
 0x55f   : > { %1542 = vrcp.f32 %v949_v21 }
 0x561   : > { %v1541_v22 = vpop.eup %1540 }
 0x562   : > { %v878_v23 = vmul.f32 %v1541_v22, %v1537_v15  ;;  %v1133_v15 = vld [vmem:[%s1905_s6 + $0x28] sm:$0xff] }
 0x563   : > { %1154 = vmatpush.msrb.mxu0 %v1133_v15 }
 0x564   : > { %1407 = vmatmul.msk.f32.vlgmr.msrb.gmra.mxu3 %vm702_vm7, %v878_v23  ;;  %v1130_v23 = vld [vmem:[%s1905_s6 + $0x10] sm:$0xff] }
 0x565   : > { %v1543_v24 = vpop.eup %1542  ;;  %1155 = vmatpush.msrb.mxu0 %v1132_v18 }
 0x566   : > { %v951_v25 = vmul.f32 %v1543_v24, %v1539_v17  ;;  %v953_v26 = vpop.permute.xlu2 %952 }
 0x567   : > { %973 = vmatpush.msrb.mxu2 %v953_v26  ;;  %1156 = vmatpush.msrb.mxu0 %v1131_v20 }
 0x568   : > { %1410 = vmatmul.msk.f32.vlgmr.msrb.gmra.mxu2 %vm702_vm7, %v951_v25  ;;  %v1129_v25 = vld [vmem:[%s1905_s6 + $0x8] sm:$0xff] }
 0x569   : > { %1157 = vmatpush.msrb.mxu0 %v1130_v23 }
 0x56b   : > { %1158 = vmatpush.msrb.mxu0 %v1129_v25 }
 0x572   : > { %v834_v27 = vpop.permute.xlu1 %833 }
 0x573   : > { %837 = vst.msk [vmem:[#allocation4] sm:$0xff] %vm836_vm8, %v834_v27  ;;  %v1128_v27 = vld [vmem:[%s1905_s6] sm:$0xff] }
 0x574   : > { %1159 = vmatpush.msrb.mxu0 %v1128_v27 }
 0x5e7   : > { %v902_v28 = vpop.f32.mrf.mxu3 }
 0x5e8   : > { %906 = vrot.lane.b32.xlu0 %v902_v28, %s1691_s12 }
 0x5eb   : > { %v975_v29 = vpop.f32.mrf.mxu2 }
 0x5f0   : > { %979 = vrot.lane.b32.xlu0 %v975_v29, %s1692_s10 }
 0x65a   : > { %v907_v34 = vpop.permute.xlu0 %906 }
 0x65b   : > { %910 = vst.msk [vmem:[#allocation4] sm:$0xff] %vm909_vm9, %v907_v34 }
 0x662   : > { %v980_v35 = vpop.permute.xlu0 %979 }
 0x663   : > { %983 = vst.msk [vmem:[#allocation4] sm:$0xff] %vm982_vm10, %v980_v35 }
 0x66a   : > { %v984_v36 = vld [vmem:[#allocation4] sm:$0xff] }
 0x66b   : > { %1411 = vmatmul.msk.f32.vlgmr.msra.gmra.mxu1 %vm631_vm1, %v984_v36 }
 0x6e8   : > { %v1009_v38 = vpop.f32.mrf.mxu1 }
 0x6e9   : > { %v1013_v39 = vadd.f32 %v1009_v38, %v1910_v1  ;;  %v1056_v1 = vld [vmem:[%s1891_s0 + $0x18] sm:$0xff] }
 0x6ea   : > { %1076 = vmatpush.msra.mxu3 %v1056_v1 }
 0x6eb   : > { %v1018_v40 = vadd.f32 %v1519_v37, %v1013_v39 }
 0x6ec   : > { %1077 = vmatpush.msra.mxu3 %v1055_v48 }
 0x6ed   : > { %1019 = vst.msk [vmem:[#allocation2] sm:$0xff] %vm631_vm1, %v1018_v40 }
 0x6ee   : > { %1078 = vmatpush.msra.mxu3 %v1054_v49 }
 0x6f0   : > { %1079 = vmatpush.msra.mxu3 %v1053_v50 }
 0x6f4   : > { %v1982_v41 = vld [vmem:[#allocation2] sm:$0xff] }
 0x6f5   : > { %v1023_v42 = vsel %vm631_vm1, %v1982_v41, 0.0 }
 0x6f6   : > { %1024 = vadd.xlane.f32.xlu2 %v1023_v42 }
 0x769   : > { %v1025_v43 = vpop.xlane.xlu2 %1024 }
 0x76a   : > { %v1026_v44 = vmul.f32 %v1025_v43, %v1914_v9 }
 0x76c   : > { %v1027_v45 = vsub.f32 %v1982_v41, %v1026_v44 }
 0x76e   : > { %v1028_v46 = vmul.f32 %v1027_v45, %v1027_v45 }
 0x770   : > { %v1029_v47 = vsel %vm631_vm1, %v1028_v46, 0.0 }
 0x771   : > { %1030 = vadd.xlane.f32.xlu1 %v1029_v47 }
 0x7e4   : > { %v1031_v51 = vpop.xlane.xlu1 %1030 }
 0x7e5   : > { %v1032_v52 = vmul.f32 %v1031_v51, %v1914_v9 }
 0x7e7   : > { %v1033_v53 = vadd.f32 1e-05, %v1032_v52 }
 0x7e9   : > { %1544 = vrsqrt.f32 %v1033_v53  ;;  %vm1040_vm12 = vweird.f32 %v1033_v53 }
 0x7ef   : > { %v1545_v54 = vpop.eup %1544 }
 0x7f0   : > { %v1035_v55 = vmul.f32 %v1545_v54, %v1033_v53  ;;  %vm1041_vm11 = vweird.f32 %v1545_v54  ;;  %v1523_v53 = vld [vmem:[%s620_s15] ss:$0 sm:$0xff] }
 0x7f1   : > { %vm1042_vm13 = vmor %vm1040_vm12, %vm1041_vm11 }
 0x7f2   : > { %v1036_v56 = vmul.f32 %v1545_v54, %v1035_v55 }
 0x7f4   : > { %v1037_v57 = vmul.f32 0.5, %v1036_v56 }
 0x7f6   : > { %v1038_v58 = vsub.f32 1.5, %v1037_v57 }
 0x7f8   : > { %v1039_v59 = vmul.f32 %v1545_v54, %v1038_v58 }
 0x7fa   : > { %v1043_v61 = vsel %vm1042_vm13, %v1545_v54, %v1039_v59 }
 0x7fb   : > { %v1044_v9 = vmul.f32 %v1043_v61, %v1027_v45 }
 0x7fd   : > { %v1048_v63 = vmul.f32 %v1520_v60, %v1044_v9 }
 0x7ff   : > { %v1052_v0 = vadd.f32 %v1521_v62, %v1048_v63 }
 0x801   : > { %1412 = vmatmul.msk.f32.vlgmr.msra.gmra.mxu3 %vm631_vm1, %v1052_v0 }
 0x884   : > { %v1081_v3 = vpop.f32.mrf.mxu3 }
 0x885   : > { %v1082_v4 = vadd.f32 %v1522_v2, %v1081_v3 }
 0x887   : > { %v1085_v5 = vmul.f32 0.70710677, %v1082_v4  ;;  %v1084_v50 = vmul.f32 0.5, %v1082_v4 }
 0x889   : > { %v1086_v6 = vmul.f32 %v1085_v5, %v1085_v5 }
 0x88b   : > { %v1087_v7 = vmin.f32 %v1086_v6, 16.0 }
 0x88d   : > { %v1088_v10 = vmul.f32 2.1237322e-06, %v1087_v7  ;;  %v1099_v11 = vmul.f32 3.8918573e-05, %v1087_v7 }
 0x88f   : > { %v1089_v13 = vadd.f32 0.00028619796, %v1088_v10  ;;  %v1100_v14 = vadd.f32 0.001143296, %v1099_v11 }
 0x891   : > { %v1090_v16 = vmul.f32 %v1089_v13, %v1087_v7  ;;  %v1101_v17 = vmul.f32 %v1100_v14, %v1087_v7 }
 0x893   : > { %v1102_v19 = vadd.f32 0.014752088, %v1101_v17  ;;  %v1091_v21 = vadd.f32 0.0036580483, %v1090_v16 }
 0x895   : > { %v1103_v22 = vmul.f32 %v1102_v19, %v1087_v7  ;;  %v1092_v26 = vmul.f32 %v1091_v21, %v1087_v7 }
 0x897   : > { %v1104_v24 = vadd.f32 0.112945676, %v1103_v22  ;;  %v1093_v30 = vadd.f32 0.05243302, %v1092_v26 }
 0x899   : > { %v1105_v28 = vmul.f32 %v1104_v24, %v1087_v7  ;;  %v1094_v33 = vmul.f32 %v1093_v30, %v1087_v7 }
 0x89b   : > { %v1106_v29 = vadd.f32 0.4994258, %v1105_v28  ;;  %v1095_v34 = vadd.f32 0.18741608, %v1094_v33 }
 0x89d   : > { %v1107_v31 = vmul.f32 %v1106_v29, %v1087_v7  ;;  %v1096_v36 = vmul.f32 %v1095_v34, %v1087_v7 }
 0x89f   : > { %v1108_v32 = vadd.f32 1.0, %v1107_v31  ;;  %v1097_v40 = vadd.f32 1.1283791, %v1096_v36 }
 0x8a1   : > { %1546 = vrcp.f32 %v1108_v32  ;;  %v1120_v39 = vand.u32 2147483648, %v1108_v32  ;;  %v1118_v43 = vand.u32 2147483647, %v1108_v32  ;;  %vm1114_vm15 = vweird.f32 %v1108_v32 }
 0x8a2   : > { %v1098_v46 = vmul.f32 %v1097_v40, %v1085_v5 }
 0x8a3   : > { %v1121_v45 = vor.u32 1.1754944e-38, %v1120_v39  ;;  %vm1119_vm2 = vcmp.eq.f32.partialorder %v1118_v43, 8.507059e+37 }
 0x8a7   : > { %v1547_v35 = vpop.eup %1546 }
 0x8a8   : > { %v1110_v37 = vmul.f32 %v1547_v35, %v1108_v32  ;;  %vm1115_vm14 = vweird.f32 %v1547_v35 }
 0x8a9   : > { %vm1116_vm0 = vmor %vm1114_vm15, %vm1115_vm14 }
 0x8aa   : > { %v1111_v38 = vsub.f32 1.0, %v1110_v37 }
 0x8ac   : > { %v1112_v42 = vmul.f32 %v1547_v35, %v1111_v38 }
 0x8ae   : > { %v1113_v44 = vadd.f32 %v1547_v35, %v1112_v42 }
 0x8b0   : > { %v1117_v47 = vsel %vm1116_vm0, %v1547_v35, %v1113_v44 }
 0x8b1   : > { %v1122_v1 = vsel %vm1119_vm2, %v1121_v45, %v1117_v47 }
 0x8b2   : > { %v1123_v48 = vmul.f32 %v1122_v1, %v1098_v46 }
 0x8b4   : > { %v1413_v49 = vclamps-f32 %v1123_v48, 1.0 }
 0x8b6   : > { %v1126_v51 = vadd.f32 1.0, %v1413_v49 }
 0x8b8   : > { %v1127_v52 = vmul.f32 %v1126_v51, %v1084_v50 }
 0x8ba   : > { %1414 = vmatmul.msk.f32.vlgmr.msrb.gmra.mxu0 %vm1140_vm3, %v1127_v52 }
 0x937   : > { %v1161_v54 = vpop.f32.mrf.mxu0 }
 0x938   : > { %v1162_v55 = vadd.f32 %v1523_v53, %v1161_v54  ;;  %1169 = sbr.rel (%p1415_p6) target bundleno = 2373 (0x945), region = 80 }
 0x93a   : > { %v1164_v56 = vadd.f32 %v1162_v55, %v1982_v41 }
 0x93c   : > { %1165 = vst.msk [vmem:[#allocation2] sm:$0xff] %vm631_vm1, %v1164_v56 }
 0x943   : > { %v1170_v57 = vld [vmem:[#allocation2] sm:$0xff] }
 0x944   : > { %1171 = vst.msk [vmem:[%s1907_s18] sm:$0xff] %vm631_vm1, %v1170_v57 }
 0x945 PF: > { %s2134_s30 = sld [smem:[#allocation14_spill]]  ;;  %s1185_s29 = sshll.u32 %s1907_s18, 4  ;;  %s1186_s29 = int_to_ptr.vmem [resolvable:$true] %s1185_s29 }
 0x946   : > { %s2135_s22 = sld [smem:[#allocation23_spill]] }
 0x947   : > { %s2137_s28 = sld [smem:[#allocation30_spill]] }
 0x94b   : > { %s1417_s11 = sshll.u32 %s2134_s30, 3 }
 0x94c   : > { %s1173_s24 = scalar_lea.sflag [#allocation7], %s2135_s22 }
 0x94d   : > { %s2138_s12 = smov %s2137_s28  ;;  %s1183_s10 = scalar_lea.hbm %s2137_s28, %s1417_s11 }
 0x94e   : > { %s1187_s26 = sshll.u32 %s1183_s10, 4  ;;  %s1598_s19 = scalar_lea.hbm %s2138_s12, 16  ;;  %s1188_s26 = int_to_ptr.hbm [resolvable:$true] %s1187_s26 }
 0x94f   : > { %s1592_s16 = sshra.s32 %s1188_s26, 4  ;;  %s1593_s16 = int_to_ptr.hbm [resolvable:$true] %s1592_s16 }
 0x950   : > { %s1594_s23 = scalar_lea.hbm %s1593_s16, 8  ;;  %p1599_p12 = scmp.lt.s32.totalorder %s1593_s16, %s2138_s12 }
 0x951   : > { %p1595_p7 = scmp.ne.s32.totalorder %s1593_s16, %s1594_s23  ;;  %p1600_p13 = scmp.lt.s32.totalorder %s1598_s19, %s1594_s23 }
 0x953   : > { %p1596_p8 = pnand %p1595_p7, %p1821_p10  ;;  %p1601_p0 = por %p1600_p13, %p1599_p12 }
 0x955   : > { %p1597_p9 = pneg %p1596_p8 }
 0x957   : > { %p1602_p1 = pnand %p1601_p0, %p1597_p9 }
 0x959   : > { %1605 = shalt.err (!%p1602_p1)
}
 0x95a   : > { %1426 = dma.vmem_to_hbm [thread:$0]  (%p1821_p10), %s1186_s29, 128, %s1188_s26, %s1173_s24  }
 0x95b PF: > { %s2139_s18 = sld [smem:[#allocation17_spill]] }
 0x95c   : > { %s2140_s25 = sld [smem:[#allocation11_spill]] }
 0x961   : > { %p1437_p2 = scmp.ge.s32.totalorder %s2139_s18, 2 }
 0x962   : > { %s1199_s3 = sand.u32 1, %s2140_s25  }
 0x963   : > { %p1433_p4 = pnand %p1437_p2, %p1827_p11  ;;  %s1200_s6 = scalar_lea.sflag [#allocation7], %s1199_s3 }
 0x965   : > { %p1434_p3 = pneg %p1433_p4 }
 0x967   : > { %1643 = dma.done.wait (%p1434_p3), %s1200_s6, 128  }
 0x968   : > { %1645 = vsyncadd (%p1434_p3), %s1200_s6, 4294967168  ;;  %s28_s28 = sadd.s32 1, %s2139_s18   ;;  %s2142_s21 = sld [smem:[#allocation12_spill]] }
 0x969   : > { %p25_p5 = scmp.ge.s32.totalorder %s28_s28, 6   ;;  %s2143_s22 = sld [smem:[#allocation13_spill]] }
 0x96a   : > { %s2144_s23 = sld [smem:[#allocation22_spill]] }
 0x96b   : > { %s2145_s24 = sld [smem:[#allocation15_spill]]  ;;  %27 = sbr.rel (!%p25_p5) target bundleno = 15 (0xf), region = 154 }
 0x96c   : > { %s2146_s25 = sld [smem:[#allocation16_spill]] }
 0x96d   : > { %s2147_s26 = sld [smem:[#allocation18_spill]] }
 0x96e   : > { %s2148_s27 = sld [smem:[#allocation19_spill]] }
 0x970   :  { %1206 = vsyncpa [#allocation6], 1 }
 0x971   :  { %1208 = vsyncpa [#allocation6 + $0x1], 1 }
 0x972   :  { %1209 = vsyncpa [#allocation7], 1 }
 0x973   :  { %1211 = vsyncpa [#allocation7 + $0x1], 1 }

</bundles_post_ra>
